<compile_context>
chip_gen: v5e
topology: v5e:2x2
jax: 0.10.0
libtpu: 0.0.40
codegen_flags: <defaults>
</compile_context>

<pallas_src>
import functools

import jax
import jax.numpy as jnp
from jax.experimental import pallas as pl
from jax.experimental.pallas import tpu as pltpu


def _round_up(x, m):
    return ((x + m - 1) // m) * m


def _cdiv(a, b):
    return (a + b - 1) // b


def _vmem_budgets():
    """Generation-aware (per-input-tile budget, vmem_limit_bytes)."""
    cap = None
    try:
        cap = getattr(pltpu.get_tpu_info(), "vmem_capacity_bytes", None)
    except Exception:
        cap = None
    if cap is None:
        try:
            kind = jax.devices()[0].device_kind.lower()
            cap = (128 * 1024 * 1024
                   if ("v4" in kind or "v5" in kind or "v6" in kind)
                   else 64 * 1024 * 1024)
        except Exception:
            cap = 64 * 1024 * 1024
    if cap >= 96 * 1024 * 1024:
        # v5e / v6e: 128 MiB physical VMEM -> big streaming tiles.
        return 20 * 1024 * 1024, 80 * 1024 * 1024
    # v7x (64 MiB per TensorCore) or unknown: stay conservative.
    return 12 * 1024 * 1024, 48 * 1024 * 1024


def _pool_kernel(x_ref, o_ref, acc_ref, *, spc, ts, seq_len, need_mask):
    """Sum-pool over the sequence axis into per-(chunk, batch-tile) partials."""
    c = pl.program_id(0)          # sequence chunk (parallel)
    s = pl.program_id(2)          # seq tile within chunk (arbitrary reduction)

    @pl.when(s == 0)
    def _():
        acc_ref[...] = jnp.zeros_like(acc_ref)

    x = x_ref[...].astype(jnp.float32)                       # (tb, ts, H)
    if need_mask:
        # Zero out sequence positions past S (ragged tail / phantom tiles).
        g = c * spc + s                                       # global seq tile
        pos = g * ts + jax.lax.broadcasted_iota(jnp.int32, (1, ts, 1), 1)
        x = jnp.where(pos < seq_len, x, 0.0)
    acc_ref[...] += jnp.sum(x, axis=1)

    @pl.when(s == spc - 1)
    def _():
        o_ref[0] = acc_ref[...]


def _head_kernel(p_ref, w1_ref, b1_ref, w2_ref, b2_ref, w3_ref, b3_ref, o_ref,
                 *, inv_seq_len):
    """Combine chunk partials -> mean-pool -> 3-layer MLP (ReLU, ReLU, linear)."""
    pooled = jnp.sum(p_ref[...], axis=0) * inv_seq_len        # (tb, H)

    h1 = jnp.dot(pooled, w1_ref[...], preferred_element_type=jnp.float32)
    h1 = jnp.maximum(h1 + b1_ref[...], 0.0)

    h2 = jnp.dot(h1, w2_ref[...], preferred_element_type=jnp.float32)
    h2 = jnp.maximum(h2 + b2_ref[...], 0.0)

    out = jnp.dot(h2, w3_ref[...], preferred_element_type=jnp.float32)
    o_ref[...] = (out + b3_ref[...]).astype(o_ref.dtype)


def dna_bert_mlp_head(last_hidden_states, w1, b1, w2, b2, w3, b3,
                      *, tile_budget_bytes=None, max_chunks=2):
    """Pallas implementation of DNABertMLPModel's pooling + MLP head.

    Args:
      last_hidden_states: (B, S, H) float32 or bfloat16 DNA-BERT hidden states.
      w1: (H, L), b1: (1, L)   -- linear1 (weights pre-transposed to (in, out))
      w2: (L, L), b2: (1, L)   -- linear2
      w3: (L, C), b3: (1, C)   -- linear3
    Returns:
      logits: (B, C) float32
    """
    B, S, H = last_hidden_states.shape
    L = w1.shape[1]
    C = w3.shape[1]
    itemsize = jnp.dtype(last_hidden_states.dtype).itemsize

    budget, vmem_limit = _vmem_budgets()
    if tile_budget_bytes is not None:
        budget = tile_budget_bytes

    # ---- Batch tiling: balanced tiles, no padding of the big input in HBM.
    n_bt = max(1, _cdiv(B, 128))
    tb = min(_round_up(_cdiv(B, n_bt), 8), _round_up(B, 8))
    b_tiles = _cdiv(B, tb)
    b_pad = b_tiles * tb            # padding only on the tiny pooled/output arrays

    # ---- Sequence tiling: biggest tile (multiple of the dtype's sublane
    #      packing) whose (tb, ts, H) slab fits the per-buffer budget.
    packing = 8 * max(1, 4 // itemsize)        # f32: 8, bf16: 16, int8: 32
    if tb * S * H * itemsize <= budget:
        ts = S
    else:
        max_ts = budget // (tb * H * itemsize)
        ts = max(packing, (max_ts // packing) * packing)
        ts = min(ts, S)
    s_tiles = _cdiv(S, ts)

    # ---- Chunk the sequence reduction so the parallel grid axes have >= 2
    #      steps even for tiny batches (keeps both v7x TensorCores busy).
    if b_tiles >= 2 or s_tiles < 2:
        n_chunks = 1
    else:
        n_chunks = min(max_chunks, s_tiles)
    spc = _cdiv(s_tiles, n_chunks)             # seq tiles per chunk
    phantom = n_chunks * spc != s_tiles        # last chunk has a phantom tile
    need_mask = (S % ts != 0) or phantom

    last_tile = s_tiles - 1
    if phantom:
        # Clamp the DMA source for phantom tiles; the in-kernel mask (computed
        # from the UNclamped global tile index) zeroes their contribution.
        x_index = lambda c, i, s: (i, jnp.minimum(c * spc + s, last_tile), 0)
    else:
        x_index = lambda c, i, s: (i, c * spc + s, 0)

    pool_cost = pl.CostEstimate(
        flops=B * S * H,
        transcendentals=0,
        bytes_accessed=B * S * H * itemsize + n_chunks * b_pad * H * 4,
    )

    partials = pl.pallas_call(
        functools.partial(_pool_kernel, spc=spc, ts=ts, seq_len=S,
                          need_mask=need_mask),
        out_shape=jax.ShapeDtypeStruct((n_chunks, b_pad, H), jnp.float32),
        grid=(n_chunks, b_tiles, spc),
        in_specs=[pl.BlockSpec((tb, ts, H), x_index)],
        out_specs=pl.BlockSpec((1, tb, H), lambda c, i, s: (c, i, 0)),
        scratch_shapes=[pltpu.VMEM((tb, H), jnp.float32)],
        compiler_params=pltpu.CompilerParams(
            dimension_semantics=("parallel", "parallel", "arbitrary"),
            vmem_limit_bytes=vmem_limit,
        ),
        cost_estimate=pool_cost,
    )(last_hidden_states)

    # ---- Tiny MLP head on the pooled activations (lane-dense padded classes).
    c_pad = _round_up(max(C, 1), 128)
    w3p = jnp.pad(w3, ((0, 0), (0, c_pad - C))) if c_pad != C else w3
    b3p = jnp.pad(b3, ((0, 0), (0, c_pad - C))) if c_pad != C else b3

    out = pl.pallas_call(
        functools.partial(_head_kernel, inv_seq_len=1.0 / S),
        out_shape=jax.ShapeDtypeStruct((b_pad, c_pad), jnp.float32),
        grid=(b_tiles,),
        in_specs=[
            pl.BlockSpec((n_chunks, tb, H), lambda i: (0, i, 0)),  # partials
            pl.BlockSpec((H, L), lambda i: (0, 0)),                # w1 (resident)
            pl.BlockSpec((1, L), lambda i: (0, 0)),                # b1
            pl.BlockSpec((L, L), lambda i: (0, 0)),                # w2
            pl.BlockSpec((1, L), lambda i: (0, 0)),                # b2
            pl.BlockSpec((L, c_pad), lambda i: (0, 0)),            # w3 (padded)
            pl.BlockSpec((1, c_pad), lambda i: (0, 0)),            # b3 (padded)
        ],
        out_specs=pl.BlockSpec((tb, c_pad), lambda i: (i, 0)),
        compiler_params=pltpu.CompilerParams(
            dimension_semantics=("parallel",),
            vmem_limit_bytes=32 * 1024 * 1024,
        ),
    )(partials, w1, b1, w2, b2, w3p, b3p)

    return out[:B, :C]


def _torch_linear_init(key, fan_in, fan_out):
    """Deterministic init mimicking nn.Linear default (uniform ±1/sqrt(fan_in)).

    Returns W already transposed to (fan_in, fan_out) and bias as (1, fan_out).
    """
    kw, kb = jax.random.split(key)
    bound = 1.0 / jnp.sqrt(fan_in)
    w = jax.random.uniform(kw, (fan_in, fan_out), jnp.float32, -bound, bound)
    b = jax.random.uniform(kb, (1, fan_out), jnp.float32, -bound, bound)
    return w, b


def _reference(x, w1, b1, w2, b2, w3, b3):
    pooled = jnp.mean(x.astype(jnp.float32), axis=1)
    h = jnp.maximum(pooled @ w1 + b1, 0.0)
    h = jnp.maximum(h @ w2 + b2, 0.0)
    return h @ w3 + b3


if __name__ == "__main__":
    # Small shapes consistent with the forward pass:
    #   batch=2, seq=8, hidden=32, layer_size=128, num_classes=4
    B, S, H = 2, 8, 32
    LAYER_SIZE = 128
    NUM_CLASSES = 4

    key = jax.random.PRNGKey(0)
    k_x, k1, k2, k3 = jax.random.split(key, 4)

    last_hidden_states = jax.random.normal(k_x, (B, S, H), jnp.float32)
    w1, b1 = _torch_linear_init(k1, H, LAYER_SIZE)
    w2, b2 = _torch_linear_init(k2, LAYER_SIZE, LAYER_SIZE)
    w3, b3 = _torch_linear_init(k3, LAYER_SIZE, NUM_CLASSES)

    # f32 input path (tight tolerance).
    logits = dna_bert_mlp_head(last_hidden_states, w1, b1, w2, b2, w3, b3)
    logits = jax.block_until_ready(logits)
    ref = _reference(last_hidden_states, w1, b1, w2, b2, w3, b3)
    assert logits.shape == (B, NUM_CLASSES)
    assert jnp.allclose(logits, ref, atol=1e-5, rtol=1e-5)

    # bf16 input path (halved HBM traffic); f32 accumulation inside the kernel.
    x_bf16 = last_hidden_states.astype(jnp.bfloat16)
    logits_bf16 = jax.block_until_ready(
        dna_bert_mlp_head(x_bf16, w1, b1, w2, b2, w3, b3))
    ref_bf16 = _reference(x_bf16, w1, b1, w2, b2, w3, b3)
    assert logits_bf16.shape == (B, NUM_CLASSES)
    assert jnp.allclose(logits_bf16, ref_bf16, atol=1e-2, rtol=1e-2)

    # Ragged / chunked path: force a small tile budget so ts < S, two parallel
    # sequence chunks and a phantom tail tile -> exercises the in-kernel
    # masking that replaces the old wrapper-side jnp.pad.
    B2, S2 = 3, 40
    x2 = jax.random.normal(jax.random.PRNGKey(1), (B2, S2, H), jnp.float32)
    logits2 = jax.block_until_ready(
        dna_bert_mlp_head(x2, w1, b1, w2, b2, w3, b3,
                          tile_budget_bytes=8 * 8 * H * 4))   # -> ts=8, 5 tiles
    ref2 = _reference(x2, w1, b1, w2, b2, w3, b3)
    assert logits2.shape == (B2, NUM_CLASSES)
    assert jnp.allclose(logits2, ref2, atol=1e-5, rtol=1e-5)

    print("KERNEL_OK")
</pallas_src>

<mosaic_0001>
module attributes {stable_mosaic.version = 11 : i64} {
  func.func @_pool_kernel(%arg0: i32, %arg1: i32, %arg2: i32, %arg3: memref<8x8x32xf32, #tpu.memory_space<vmem>>, %arg4: memref<1x8x32xf32, #tpu.memory_space<vmem>>, %arg5: memref<8x32xf32, #tpu.memory_space<vmem>>) attributes {dimension_semantics = [#tpu.dimension_semantics<parallel>, #tpu.dimension_semantics<parallel>, #tpu.dimension_semantics<arbitrary>], iteration_bounds = array<i64: 1, 1, 1>, scalar_prefetch = 0 : i64, scratch_operands = 1 : i64, tpu.core_type = #tpu.core_type<tc>, window_params = [{transform_indices = @transform_0, window_bounds = array<i64: 8, 8, 32>}, {transform_indices = @transform_1, window_bounds = array<i64: 1, 8, 32>}]} {
    %c0_i32 = arith.constant 0 : i32
    %0 = arith.cmpi eq, %arg2, %c0_i32 : i32
    %1 = arith.extui %0 : i1 to i32
    %c0_i32_0 = arith.constant 0 : i32
    %2 = arith.cmpi ne, %1, %c0_i32_0 : i32
    scf.if %2 {
      %cst_9 = arith.constant 0.000000e+00 : f32
      %11 = vector.broadcast %cst_9 : f32 to vector<8x32xf32>
      %c0_10 = arith.constant 0 : index
      %c0_11 = arith.constant 0 : index
      %12 = vector.load %arg5[%c0_10, %c0_11] : memref<8x32xf32, #tpu.memory_space<vmem>>, vector<8x32xf32>
      tpu.vector_store %arg5[%c0_10, %c0_11], %11 {strides = array<i32>} : memref<8x32xf32, #tpu.memory_space<vmem>>, vector<8x32xf32>,
    } else {
    }
    %c0 = arith.constant 0 : index
    %c0_1 = arith.constant 0 : index
    %c0_2 = arith.constant 0 : index
    %3 = vector.load %arg3[%c0, %c0_1, %c0_2] : memref<8x8x32xf32, #tpu.memory_space<vmem>>, vector<8x8x32xf32>
    %c0_3 = arith.constant 0 : index
    %c0_4 = arith.constant 0 : index
    %4 = vector.load %arg5[%c0_3, %c0_4] : memref<8x32xf32, #tpu.memory_space<vmem>>, vector<8x32xf32>
    %cst = arith.constant dense<0.000000e+00> : vector<8x32xf32>
    %5 = vector.multi_reduction <add>, %3, %cst [1] : vector<8x8x32xf32> to vector<8x32xf32>
    %6 = arith.addf %4, %5 : vector<8x32xf32>
    %c0_5 = arith.constant 0 : index
    %c0_6 = arith.constant 0 : index
    %7 = vector.load %arg5[%c0_5, %c0_6] : memref<8x32xf32, #tpu.memory_space<vmem>>, vector<8x32xf32>
    tpu.vector_store %arg5[%c0_5, %c0_6], %6 {strides = array<i32>} : memref<8x32xf32, #tpu.memory_space<vmem>>, vector<8x32xf32>,
    %c0_i32_7 = arith.constant 0 : i32
    %8 = arith.cmpi eq, %arg2, %c0_i32_7 : i32
    %9 = arith.extui %8 : i1 to i32
    %c0_i32_8 = arith.constant 0 : i32
    %10 = arith.cmpi ne, %9, %c0_i32_8 : i32
    scf.if %10 {
      %c0_9 = arith.constant 0 : index
      %c0_10 = arith.constant 0 : index
      %11 = vector.load %arg5[%c0_9, %c0_10] : memref<8x32xf32, #tpu.memory_space<vmem>>, vector<8x32xf32>
      %c0_11 = arith.constant 0 : index
      %c0_12 = arith.constant 0 : index
      %c0_13 = arith.constant 0 : index
      %12 = vector.load %arg4[%c0_11, %c0_12, %c0_13] : memref<1x8x32xf32, #tpu.memory_space<vmem>>, vector<1x8x32xf32>
      %13 = vector.shape_cast %12 : vector<1x8x32xf32> to vector<8x32xf32>
      %14 = vector.shape_cast %11 : vector<8x32xf32> to vector<1x8x32xf32>
      tpu.vector_store %arg4[%c0_11, %c0_12, %c0_13], %14 {strides = array<i32>} : memref<1x8x32xf32, #tpu.memory_space<vmem>>, vector<1x8x32xf32>,
    } else {
    }
    return
  }
  func.func @transform_0(%arg0: i32, %arg1: i32, %arg2: i32) -> (i32, i32, i32) {
    %c1_i32 = arith.constant 1 : i32
    %0 = arith.muli %arg0, %c1_i32 : i32
    %1 = arith.addi %0, %arg2 : i32
    %c0_i32 = arith.constant 0 : i32
    %c0_i32_0 = arith.constant 0 : i32
    return %arg1, %1, %c0_i32 : i32, i32, i32
  }
  func.func @transform_1(%arg0: i32, %arg1: i32, %arg2: i32) -> (i32, i32, i32) {
    %c0_i32 = arith.constant 0 : i32
    %c0_i32_0 = arith.constant 0 : i32
    return %arg0, %arg1, %c0_i32 : i32, i32, i32
  }
}

</mosaic_0001>

<bundles_post_ra>
// kernel: tpu_custom_call.1
= control target key start
LH: loop header
LB: loop body
LE: loop exit
PB: predicated region body
PF: predicated region fallthrough
CT: control target
= control target key end

     0   :  { %6 = vsyncpa [#allocation4], 0  ;;  %s239_s0 = inlined_call_operand.hbm [shape: f32[2,8,32], index: 0, kind: input, shape index: {}]   ;;  %s240_s1 = inlined_call_operand.hbm [shape: f32[1,8,32], index: 1, kind: output, shape index: {}]  }
   0x1   :  { %7 = vsyncpa [#allocation5], 0 }
   0x2   :  { %12 = vsyncadd [#allocation4], 768  ;;  %s15_s8 = sshll.u32 %s239_s0, 4  ;;  %s205_s9 = smov [#allocation3]   ;;  %s16_s8 = int_to_ptr.hbm [resolvable:$true] %s15_s8 }
   0x3   :  { %s17_s10 = sshll.u32 %s205_s9, 4  ;;  %s206_s11 = smov 128   ;;  %s18_s10 = int_to_ptr.vmem [resolvable:$true] %s17_s10 }
   0x4   :  { %s207_s12 = smov 8  }
   0x5   :  { %23 = dma.hbm_to_vmem [thread:$0]  %s16_s8, 256, %s18_s10, [#allocation4], %s206_s11, %s206_s11, %s207_s12  }
   0x6   :  { %201 = dma.done.wait [#allocation4], 1024  }
   0x7   :  { %202 = vsyncadd [#allocation4], 4294966272  ;;  %vm33_vm0 = vcmask 261120   ;;  %v208_v0 = vmov 0.0   ;;  %v35_v1 = vld [vmem:[#allocation3] sm:$0xff]  ;;  %v36_v2 = vld [vmem:[#allocation3 + $0x8] sm:$0xff] }
   0x8   :  { %34 = vst.msk [vmem:[#allocation2] sm:$0xff] %vm33_vm0, %v208_v0  ;;  %v37_v3 = vld [vmem:[#allocation3 + $0x10] sm:$0xff]  ;;  %v38_v4 = vld [vmem:[#allocation3 + $0x18] sm:$0xff]  ;;  %v39_v5 = vld [vmem:[#allocation3 + $0x20] sm:$0xff]  ;;  %v45_v7 = vsel %vm33_vm0, %v35_v1, 0.0  ;;  %v52_v8 = vsel %vm33_vm0, %v36_v2, 0.0 }
   0x9   :  { %v40_v6 = vld [vmem:[#allocation3 + $0x28] sm:$0xff]  ;;  %v59_v9 = vsel %vm33_vm0, %v37_v3, 0.0  ;;  %v41_v10 = vld [vmem:[#allocation3 + $0x30] sm:$0xff]  ;;  %v42_v11 = vld [vmem:[#allocation3 + $0x38] sm:$0xff]  ;;  %v46_v12 = vrot.slane %v45_v7, 4  ;;  %v53_v13 = vrot.slane %v52_v8, 4 }
   0xa   :  { %v60_v14 = vrot.slane %v59_v9, 4  ;;  %v66_v15 = vsel %vm33_vm0, %v38_v4, 0.0  ;;  %v73_v16 = vsel %vm33_vm0, %v39_v5, 0.0  ;;  %v80_v17 = vsel %vm33_vm0, %v40_v6, 0.0  ;;  %s209_s0 = smov [#allocation6]   ;;  %s138_s16 = sshll.u32 %s240_s1, 4  ;;  %s139_s16 = int_to_ptr.hbm [resolvable:$true] %s138_s16 }
   0xb   :  { %v87_v18 = vsel %vm33_vm0, %v41_v10, 0.0  ;;  %vm109_vm1 = vcmask 1041409   ;;  %v47_v19 = vadd.f32 %v46_v12, %v45_v7  ;;  %v54_v20 = vadd.f32 %v53_v13, %v52_v8  ;;  %s136_s13 = sshll.u32 %s209_s0, 4  ;;  %s137_s13 = int_to_ptr.vmem [resolvable:$true] %s136_s13 }
   0xc   :  { %v61_v21 = vadd.f32 %v60_v14, %v59_v9  ;;  %v67_v22 = vrot.slane %v66_v15, 4  ;;  %v74_v23 = vrot.slane %v73_v16, 4  ;;  %v81_v24 = vrot.slane %v80_v17, 4 }
   0xd   :  { %v88_v25 = vrot.slane %v87_v18, 4  ;;  %v94_v26 = vsel %vm33_vm0, %v42_v11, 0.0  ;;  %vm111_vm2 = vcmask 1042434   ;;  %v48_v27 = vrot.slane %v47_v19, 2 }
   0xe   :  { %v55_v28 = vrot.slane %v54_v20, 2  ;;  %v62_v29 = vrot.slane %v61_v21, 2  ;;  %v68_v30 = vadd.f32 %v67_v22, %v66_v15  ;;  %v75_v31 = vadd.f32 %v74_v23, %v73_v16 }
   0xf   :  { %v82_v32 = vadd.f32 %v81_v24, %v80_v17  ;;  %v89_v33 = vadd.f32 %v88_v25, %v87_v18  ;;  %v95_v34 = vrot.slane %v94_v26, 4  ;;  %v49_v35 = vadd.f32 %v48_v27, %v47_v19  ;;  %v43_v5 = vld [vmem:[#allocation2] sm:$0xff] }
  0x10   :  { %v56_v36 = vadd.f32 %v55_v28, %v54_v20  ;;  %v63_v37 = vadd.f32 %v62_v29, %v61_v21  ;;  %v69_v38 = vrot.slane %v68_v30, 2  ;;  %v76_v39 = vrot.slane %v75_v31, 2 }
  0x11   :  { %v83_v40 = vrot.slane %v82_v32, 2  ;;  %v90_v41 = vrot.slane %v89_v33, 2  ;;  %v96_v42 = vadd.f32 %v95_v34, %v94_v26  ;;  %v50_v43 = vrot.slane %v49_v35, 1 }
  0x12   :  { %v57_v44 = vrot.slane %v56_v36, 1  ;;  %v64_v45 = vrot.slane %v63_v37, 1  ;;  %v70_v46 = vadd.f32 %v69_v38, %v68_v30  ;;  %v77_v47 = vadd.f32 %v76_v39, %v75_v31 }
  0x13   :  { %v84_v48 = vadd.f32 %v83_v40, %v82_v32  ;;  %v91_v49 = vadd.f32 %v90_v41, %v89_v33  ;;  %v97_v50 = vrot.slane %v96_v42, 2  ;;  %v51_v51 = vadd.f32 %v50_v43, %v49_v35 }
  0x14   :  { %v58_v52 = vadd.f32 %v57_v44, %v56_v36  ;;  %v65_v53 = vadd.f32 %v64_v45, %v63_v37  ;;  %v71_v54 = vrot.slane %v70_v46, 1  ;;  %v78_v55 = vrot.slane %v77_v47, 1 }
  0x15   :  { %v85_v56 = vrot.slane %v84_v48, 1  ;;  %v92_v57 = vrot.slane %v91_v49, 1  ;;  %v98_v58 = vadd.f32 %v97_v50, %v96_v42  ;;  %vm113_vm3 = vcmask 1043459  }
  0x16   :  { %v72_v59 = vadd.f32 %v71_v54, %v70_v46  ;;  %v110_v60 = vsel %vm109_vm1, %v58_v52, %v51_v51  ;;  %v79_v61 = vadd.f32 %v78_v55, %v77_v47  ;;  %vm115_vm4 = vcmask 1044484  }
  0x17   :  { %v86_v62 = vadd.f32 %v85_v56, %v84_v48  ;;  %v99_v63 = vrot.slane %v98_v58, 1  ;;  %v93_v0 = vadd.f32 %v92_v57, %v91_v49  ;;  %v112_v1 = vsel %vm111_vm2, %v65_v53, %v110_v60 }
  0x18   :  { %vm117_vm5 = vcmask 1045509   ;;  %v114_v3 = vsel %vm113_vm3, %v72_v59, %v112_v1  ;;  %vm119_vm6 = vcmask 1046534   ;;  %vm121_vm7 = vcmask 1047559  }
  0x19   :  { %v100_v2 = vadd.f32 %v99_v63, %v98_v58  ;;  %v116_v4 = vsel %vm115_vm4, %v79_v61, %v114_v3 }
  0x1a   :  { %v118_v6 = vsel %vm117_vm5, %v86_v62, %v116_v4 }
  0x1b   :  { %v120_v7 = vsel %vm119_vm6, %v93_v0, %v118_v6 }
  0x1c   :  { %v122_v8 = vsel %vm121_vm7, %v100_v2, %v120_v7 }
  0x1d   :  { %v124_v9 = vadd.f32 %v122_v8, %v43_v5 }
  0x1f   :  { %125 = vst.msk [vmem:[#allocation2] sm:$0xff] %vm33_vm0, %v124_v9 }
  0x26   :  { %v129_v10 = vld [vmem:[#allocation2] sm:$0xff] }
  0x27   :  { %130 = vst.msk [vmem:[#allocation6] sm:$0xff] %vm33_vm0, %v129_v10 }
  0x28   :  { %141 = dma.vmem_to_hbm [thread:$0]  %s137_s13, 128, %s139_s16, [#allocation5]  }
  0x29   :  { %203 = dma.done.wait [#allocation5], 128  }
  0x2a   :  { %204 = vsyncadd [#allocation5], 4294967168 }
  0x2b   :  { %146 = vsyncpa [#allocation4], 1 }
  0x2c   :  { %147 = vsyncpa [#allocation5], 1 }

</bundles_post_ra>
